<compile_context>
chip_gen: v5e
topology: v5e:2x2
jax: 0.10.0
libtpu: 0.0.40
codegen_flags: <defaults>
</compile_context>

<pallas_src>
import jax
import jax.numpy as jnp
from jax.experimental import pallas as pl
from jax.experimental.pallas import tpu as pltpu


# TODO(synk): BaseModel defines no concrete math; identity pass-through is the
# only semantics the base class itself specifies, so that is the kernel body.
# (save()/load() state-dict I/O has no kernel equivalent.)
def _identity_kernel(x_ref, o_ref):
    # Whole-tile copy: unmasked vector loads/stores on a lane-dense slab.
    o_ref[...] = x_ref[...]


# Target block size (bytes): ~8 MiB regardless of dtype.  Double-buffered input
# + output => ~32 MiB of VMEM buffers, which fits v7x's 64 MiB physical VMEM
# per TensorCore and is comfortably inside v5e/v6e's 128 MiB.
_TARGET_BLOCK_BYTES = 8 << 20
# Above this size, split a single-block input into >=2 blocks so both v7x
# TensorCores get work ("parallel" grid axis).
_SPLIT_THRESHOLD_BYTES = 2 << 20


def _pallas_identity_2d(x2d: jax.Array, tile_rows: int, lanes: int) -> jax.Array:
    rows = x2d.shape[0]
    itemsize = jnp.dtype(x2d.dtype).itemsize
    grid = (pl.cdiv(rows, tile_rows),)
    return pl.pallas_call(
        _identity_kernel,
        out_shape=jax.ShapeDtypeStruct((rows, lanes), x2d.dtype),
        grid=grid,
        in_specs=[pl.BlockSpec((tile_rows, lanes), lambda i: (i, 0))],
        out_specs=pl.BlockSpec((tile_rows, lanes), lambda i: (i, 0)),
        compiler_params=pltpu.CompilerParams(
            # "parallel" is load-bearing on v7x (2 TensorCores share the grid);
            # ~neutral on v5e/v6e.
            dimension_semantics=("parallel",),
            # 8 MiB blocks, double-buffered in + out ~= 32 MiB; 48 MiB leaves
            # headroom while staying under v7x's 64 MiB physical VMEM.  On
            # v5e/v6e (128 MiB) this is conservative but already at roofline.
            vmem_limit_bytes=48 << 20,
        ),
        cost_estimate=pl.CostEstimate(
            flops=0,
            transcendentals=0,
            bytes_accessed=2 * rows * lanes * itemsize,
        ),
    )(x2d)


@jax.jit
def base_model_forward(x: jax.Array) -> jax.Array:
    """Pallas 'forward' for BaseModel: identity on the input tensor.

    Accepts any shape/dtype; returns an array of identical shape/dtype.

    Note: for a true identity the fastest path is to return `x` directly (zero
    HBM traffic).  We keep the explicit pallas_call since the point is to
    exercise the kernel path, but with roofline-sized, dtype-aware blocks and
    no pad/slice round trips so the copy runs at HBM bandwidth.
    """
    orig_shape, dtype = x.shape, x.dtype
    total = x.size
    if total == 0:
        # (0, lanes) blocks fail at lowering; identity on empty is just x.
        return x

    itemsize = jnp.dtype(dtype).itemsize
    flat = x.reshape(-1)

    # --- choose a lane-dense layout without padding when possible ------------
    if total % 128 == 0:
        lanes = 512 if total % 512 == 0 else (256 if total % 256 == 0 else 128)
        rows = total // lanes
        padded_rows = rows
        x2d = flat.reshape(rows, lanes)
    else:
        # Rare misaligned case: pad the lane remainder only (one extra pass).
        # TODO(synk): could DMA a tiny tail chunk separately to avoid the pad,
        # but for identity semantics this path is correctness-only.
        lanes = 128
        rows = pl.cdiv(total, lanes)
        padded_rows = rows
        x2d = jnp.pad(flat, (0, rows * lanes - total)).reshape(rows, lanes)

    # --- dtype-aware block sizing (byte budget, sublane-multiple rows) -------
    sublane = max(8, 32 // itemsize)  # 8 for f32, 16 for bf16, 32 for int8/fp8
    tile_rows = max(
        sublane,
        (_TARGET_BLOCK_BYTES // (lanes * itemsize)) // sublane * sublane,
    )

    size_bytes = padded_rows * lanes * itemsize
    if padded_rows <= tile_rows:
        if size_bytes > _SPLIT_THRESHOLD_BYTES and padded_rows >= 2 * sublane:
            # Mid-sized input: split into >=2 blocks so both v7x TCs get work.
            half = pl.cdiv(padded_rows, 2)
            tile_rows = pl.cdiv(half, sublane) * sublane
        else:
            # Small input: one full-array block (legal regardless of (8,128)),
            # grid=(1,), minimal per-step overhead.
            tile_rows = padded_rows
    # else: large input -> ~8 MiB blocks; the partial last block (if any) is
    # masked by Pallas, so no row padding / trailing slice is needed.

    out2d = _pallas_identity_2d(x2d, tile_rows, lanes)

    out_flat = out2d.reshape(-1)
    if padded_rows * lanes != total:
        out_flat = out_flat[:total]
    return out_flat.reshape(orig_shape)


if __name__ == "__main__":
    key = jax.random.PRNGKey(0)
    # Small NCHW input consistent with a generic vision-style forward.
    x = jax.random.normal(key, (2, 4, 16, 16), dtype=jnp.float32)

    y = base_model_forward(x)
    y = jax.block_until_ready(y)

    # Identity semantics check (the only semantics BaseModel itself defines).
    assert y.shape == x.shape and y.dtype == x.dtype
    assert bool(jnp.allclose(y, x))

    print("KERNEL_OK")
</pallas_src>

<mosaic_0001>
module attributes {stable_mosaic.version = 11 : i64} {
  func.func @_identity_kernel(%arg0: i32, %arg1: memref<4x512xf32, #tpu.memory_space<vmem>>, %arg2: memref<4x512xf32, #tpu.memory_space<vmem>>) attributes {dimension_semantics = [#tpu.dimension_semantics<parallel>], iteration_bounds = array<i64: 1>, scalar_prefetch = 0 : i64, scratch_operands = 0 : i64, tpu.core_type = #tpu.core_type<tc>, window_params = [{transform_indices = @transform_0, window_bounds = array<i64: 4, 512>}, {transform_indices = @transform_1, window_bounds = array<i64: 4, 512>}]} {
    %c0 = arith.constant 0 : index
    %c0_0 = arith.constant 0 : index
    %0 = vector.load %arg1[%c0, %c0_0] : memref<4x512xf32, #tpu.memory_space<vmem>>, vector<4x512xf32>
    %c0_1 = arith.constant 0 : index
    %c0_2 = arith.constant 0 : index
    %1 = vector.load %arg2[%c0_1, %c0_2] : memref<4x512xf32, #tpu.memory_space<vmem>>, vector<4x512xf32>
    tpu.vector_store %arg2[%c0_1, %c0_2], %0 {strides = array<i32>} : memref<4x512xf32, #tpu.memory_space<vmem>>, vector<4x512xf32>,
    return
  }
  func.func @transform_0(%arg0: i32) -> (i32, i32) {
    %c0_i32 = arith.constant 0 : i32
    %c0_i32_0 = arith.constant 0 : i32
    return %arg0, %c0_i32 : i32, i32
  }
  func.func @transform_1(%arg0: i32) -> (i32, i32) {
    %c0_i32 = arith.constant 0 : i32
    %c0_i32_0 = arith.constant 0 : i32
    return %arg0, %c0_i32 : i32, i32
  }
}

</mosaic_0001>

<bundles_post_ra>
// kernel: base_model_forward.1
= control target key start
LH: loop header
LB: loop body
LE: loop exit
PB: predicated region body
PF: predicated region fallthrough
CT: control target
= control target key end

     0   :  { %s38_s0 = inlined_call_operand.vmem [shape: f32[4,512], index: 0, kind: input, shape index: {}]   ;;  %s39_s1 = inlined_call_operand.vmem [shape: f32[4,512], index: 1, kind: output, shape index: {}]  }
   0x1   :  { %v8_v0 = vld [vmem:[%s38_s0] sm:$0xff]  ;;  %v9_v1 = vld [vmem:[%s38_s0 + $0x8] sm:$0xff] }
   0x2   :  { %10 = vst [vmem:[%s39_s1] sm:$0xff] %v8_v0 }
   0x3   :  { %11 = vst [vmem:[%s39_s1 + $0x8] sm:$0xff] %v9_v1 }

</bundles_post_ra>
